<compile_context>
chip_gen: v6e
topology: v6e:2x2x1
jax: 0.10.0
libtpu: 0.0.40
codegen_flags: <defaults>
</compile_context>

<pallas_src>
import functools

import jax
import jax.numpy as jnp
from jax.experimental import pallas as pl
from jax.experimental.pallas import tpu as pltpu


def mlp_kernel(x_ref,
               w1_ref, b1_ref,
               w2_ref, b2_ref,
               w3_ref, b3_ref,
               w4_ref, b4_ref,
               w5_ref, b5_ref,
               out_ref,
               *, compute_dtype=jnp.float32):
    cd = compute_dtype
    x = x_ref[...].astype(cd)                                     # (1, TB)

    # layer1 (1 -> 16): K=1 contraction == rank-1 broadcast FMA (VPU).
    h = jnp.maximum(w1_ref[...].astype(cd) * x + b1_ref[...].astype(cd),
                    0.0)                                          # (16, TB)

    # layer2 (16 -> 16): MXU, f32 accumulate; bias + ReLU fused on the result.
    h = jnp.maximum(
        jnp.dot(w2_ref[...].astype(cd), h, preferred_element_type=jnp.float32)
        + b2_ref[...], 0.0).astype(cd)                            # (16, TB)

    # layer3 (16 -> 4): MXU.
    h = jnp.maximum(
        jnp.dot(w3_ref[...].astype(cd), h, preferred_element_type=jnp.float32)
        + b3_ref[...], 0.0).astype(cd)                            # (4, TB)

    # layer4 (4 -> 2): MXU (was sublane-sparse VPU FMAs).
    h = jnp.maximum(
        jnp.dot(w4_ref[...].astype(cd), h, preferred_element_type=jnp.float32)
        + b4_ref[...], 0.0).astype(cd)                            # (2, TB)

    # layer5 (2 -> 1): MXU; no ReLU on the output layer.
    out = (jnp.dot(w5_ref[...].astype(cd), h, preferred_element_type=jnp.float32)
           + b5_ref[...])                                         # (1, TB)
    out_ref[...] = out.astype(out_ref.dtype)


def _choose_tile(b_pad, cap):
    """Pick the lane-aligned batch tile.

    Big enough to amortize the ~0.35us/step pipeline overhead, capped for
    v7x's 64 MiB per-TC VMEM, and (when there is enough work) split into an
    even number of tiles so the "parallel" batch axis shards across the 2
    TensorCores on v7x (no-op on v5e/v6e).
    """
    cap = max(128, (cap // 128) * 128)
    n_tiles = pl.cdiv(b_pad, cap)
    if b_pad >= 256:
        n_tiles = max(n_tiles, 2)
        n_tiles += n_tiles % 2
    tb = pl.cdiv(pl.cdiv(b_pad, n_tiles), 128) * 128
    return max(128, min(tb, cap))


def net_medium_forward(x, params, block_b=65536, compute_dtype=jnp.float32):
    """x: (B, 1) float32.
    params: list of 5 tuples (W (out_features, in_features), b (out_features, 1)).
    block_b: max batch tile (lanes) per grid step; multiple of 128.
    compute_dtype: jnp.float32 (default, exact) or jnp.bfloat16 (v6e/v7x)."""
    B = x.shape[0]

    # Lane-dense layout: batch on the last (lane) dim, padded only to a
    # multiple of 128 (<=127 wasted lanes). The last grid block may be ragged;
    # Pallas masks its out-of-bounds writes and only padded lanes see garbage.
    b_pad = pl.cdiv(B, 128) * 128
    xt = jnp.pad(x.reshape(1, B), ((0, 0), (0, b_pad - B)))

    tb = _choose_tile(b_pad, block_b)
    n_tiles = pl.cdiv(b_pad, tb)

    flat = [xt]
    in_specs = [pl.BlockSpec((1, tb), lambda i: (0, i))]
    for (w, b) in params:
        flat.append(w)
        in_specs.append(pl.BlockSpec(w.shape, lambda i: (0, 0)))  # resident
        flat.append(b)
        in_specs.append(pl.BlockSpec(b.shape, lambda i: (0, 0)))  # resident

    n_param = sum(int(w.size) + int(b.size) for (w, b) in params)
    cost = pl.CostEstimate(
        flops=2 * b_pad * (1 * 16 + 16 * 16 + 16 * 4 + 4 * 2 + 2 * 1),
        transcendentals=0,
        bytes_accessed=4 * (2 * b_pad + n_param),
    )

    out = pl.pallas_call(
        functools.partial(mlp_kernel, compute_dtype=compute_dtype),
        out_shape=jax.ShapeDtypeStruct((1, b_pad), jnp.float32),
        grid=(n_tiles,),
        in_specs=in_specs,
        out_specs=pl.BlockSpec((1, tb), lambda i: (0, i)),
        compiler_params=pltpu.CompilerParams(
            dimension_semantics=("parallel",),      # megacore sharding on v7x
            vmem_limit_bytes=48 * 1024 * 1024,      # fits v7x's 64 MiB per TC
        ),
        cost_estimate=cost,
    )(*flat)

    # Drop padding and return in the original (B, 1) layout.
    return out[0, :B].reshape(B, 1)


def init_params(key):
    """PyTorch-default-style init: U(-1/sqrt(fan_in), 1/sqrt(fan_in)).
    Weights stored in PyTorch layout (out, in); biases as (out, 1)."""
    dims = [(1, 16), (16, 16), (16, 4), (4, 2), (2, 1)]
    params = []
    for (fan_in, fan_out) in dims:
        key, kw, kb = jax.random.split(key, 3)
        bound = 1.0 / (fan_in ** 0.5)
        w = jax.random.uniform(kw, (fan_out, fan_in), jnp.float32, -bound, bound)
        b = jax.random.uniform(kb, (fan_out, 1), jnp.float32, -bound, bound)
        params.append((w, b))
    return params


def reference_forward(x, params):
    h = x  # (B, 1)
    for i, (w, b) in enumerate(params):
        h = h @ w.T + b.T
        if i < len(params) - 1:
            h = jnp.maximum(h, 0.0)
    return h


if __name__ == "__main__":
    key = jax.random.PRNGKey(0)
    key, kx = jax.random.split(key)

    # Small deterministic example: B=300 exercises 128-padding (-> 384 lanes),
    # the even-tile split (2 tiles of 256) and the ragged/masked last block.
    B = 300
    x = jax.random.normal(kx, (B, 1), jnp.float32)
    params = init_params(key)

    out = net_medium_forward(x, params)
    out = jax.block_until_ready(out)

    ref = reference_forward(x, params)
    assert out.shape == (B, 1), out.shape
    assert jnp.allclose(out, ref, atol=1e-5, rtol=1e-5), (out, ref)

    print("KERNEL_OK")
</pallas_src>

<mosaic_0001>
module attributes {stable_mosaic.version = 11 : i64} {
  func.func @mlp_kernel(%arg0: i32, %arg1: memref<1x256xf32, #tpu.memory_space<vmem>>, %arg2: memref<16x1xf32, #tpu.memory_space<vmem>>, %arg3: memref<16x1xf32, #tpu.memory_space<vmem>>, %arg4: memref<16x16xf32, #tpu.memory_space<vmem>>, %arg5: memref<16x1xf32, #tpu.memory_space<vmem>>, %arg6: memref<4x16xf32, #tpu.memory_space<vmem>>, %arg7: memref<4x1xf32, #tpu.memory_space<vmem>>, %arg8: memref<2x4xf32, #tpu.memory_space<vmem>>, %arg9: memref<2x1xf32, #tpu.memory_space<vmem>>, %arg10: memref<1x2xf32, #tpu.memory_space<vmem>>, %arg11: memref<1x1xf32, #tpu.memory_space<vmem>>, %arg12: memref<1x256xf32, #tpu.memory_space<vmem>>) attributes {dimension_semantics = [#tpu.dimension_semantics<parallel>], iteration_bounds = array<i64: 2>, scalar_prefetch = 0 : i64, scratch_operands = 0 : i64, tpu.core_type = #tpu.core_type<tc>, window_params = [{transform_indices = @transform_0, window_bounds = array<i64: 1, 256>}, {pipeline_mode = #tpu.pipeline_mode<synchronous>, transform_indices = @transform_1, window_bounds = array<i64: 16, 1>}, {pipeline_mode = #tpu.pipeline_mode<synchronous>, transform_indices = @transform_2, window_bounds = array<i64: 16, 1>}, {pipeline_mode = #tpu.pipeline_mode<synchronous>, transform_indices = @transform_3, window_bounds = array<i64: 16, 16>}, {pipeline_mode = #tpu.pipeline_mode<synchronous>, transform_indices = @transform_4, window_bounds = array<i64: 16, 1>}, {pipeline_mode = #tpu.pipeline_mode<synchronous>, transform_indices = @transform_5, window_bounds = array<i64: 4, 16>}, {pipeline_mode = #tpu.pipeline_mode<synchronous>, transform_indices = @transform_6, window_bounds = array<i64: 4, 1>}, {pipeline_mode = #tpu.pipeline_mode<synchronous>, transform_indices = @transform_7, window_bounds = array<i64: 2, 4>}, {pipeline_mode = #tpu.pipeline_mode<synchronous>, transform_indices = @transform_8, window_bounds = array<i64: 2, 1>}, {pipeline_mode = #tpu.pipeline_mode<synchronous>, transform_indices = @transform_9, window_bounds = array<i64: 1, 2>}, {pipeline_mode = #tpu.pipeline_mode<synchronous>, transform_indices = @transform_10, window_bounds = array<i64: 1, 1>}, {transform_indices = @transform_11, window_bounds = array<i64: 1, 256>}]} {
    %c0 = arith.constant 0 : index
    %c0_0 = arith.constant 0 : index
    %0 = vector.load %arg1[%c0, %c0_0] : memref<1x256xf32, #tpu.memory_space<vmem>>, vector<1x256xf32>
    %c0_1 = arith.constant 0 : index
    %c0_2 = arith.constant 0 : index
    %1 = vector.load %arg2[%c0_1, %c0_2] : memref<16x1xf32, #tpu.memory_space<vmem>>, vector<16x1xf32>
    %2 = vector.broadcast %1 : vector<16x1xf32> to vector<16x256xf32>
    %3 = vector.broadcast %0 : vector<1x256xf32> to vector<16x256xf32>
    %4 = arith.mulf %2, %3 : vector<16x256xf32>
    %c0_3 = arith.constant 0 : index
    %c0_4 = arith.constant 0 : index
    %5 = vector.load %arg3[%c0_3, %c0_4] : memref<16x1xf32, #tpu.memory_space<vmem>>, vector<16x1xf32>
    %6 = vector.broadcast %5 : vector<16x1xf32> to vector<16x256xf32>
    %7 = arith.addf %4, %6 : vector<16x256xf32>
    %cst = arith.constant 0.000000e+00 : f32
    %8 = vector.broadcast %cst : f32 to vector<16x256xf32>
    %9 = arith.maximumf %7, %8 : vector<16x256xf32>
    %c0_5 = arith.constant 0 : index
    %c0_6 = arith.constant 0 : index
    %10 = vector.load %arg4[%c0_5, %c0_6] : memref<16x16xf32, #tpu.memory_space<vmem>>, vector<16x16xf32>
    %cst_7 = arith.constant dense<0.000000e+00> : vector<16x256xf32>
    %11 = tpu.matmul %10, %9, %cst_7 {dimension_numbers = #tpu.dot_dimension_numbers<[1], [0], [0], [1], [0, 0, 1, 1], [], []>} : vector<16x16xf32>, vector<16x256xf32>, vector<16x256xf32> -> vector<16x256xf32>
    %c0_8 = arith.constant 0 : index
    %c0_9 = arith.constant 0 : index
    %12 = vector.load %arg5[%c0_8, %c0_9] : memref<16x1xf32, #tpu.memory_space<vmem>>, vector<16x1xf32>
    %13 = vector.broadcast %12 : vector<16x1xf32> to vector<16x256xf32>
    %14 = arith.addf %11, %13 : vector<16x256xf32>
    %cst_10 = arith.constant 0.000000e+00 : f32
    %15 = vector.broadcast %cst_10 : f32 to vector<16x256xf32>
    %16 = arith.maximumf %14, %15 : vector<16x256xf32>
    %c0_11 = arith.constant 0 : index
    %c0_12 = arith.constant 0 : index
    %17 = vector.load %arg6[%c0_11, %c0_12] : memref<4x16xf32, #tpu.memory_space<vmem>>, vector<4x16xf32>
    %cst_13 = arith.constant dense<0.000000e+00> : vector<4x256xf32>
    %18 = tpu.matmul %17, %16, %cst_13 {dimension_numbers = #tpu.dot_dimension_numbers<[1], [0], [0], [1], [0, 0, 1, 1], [], []>} : vector<4x16xf32>, vector<16x256xf32>, vector<4x256xf32> -> vector<4x256xf32>
    %c0_14 = arith.constant 0 : index
    %c0_15 = arith.constant 0 : index
    %19 = vector.load %arg7[%c0_14, %c0_15] : memref<4x1xf32, #tpu.memory_space<vmem>>, vector<4x1xf32>
    %20 = vector.broadcast %19 : vector<4x1xf32> to vector<4x256xf32>
    %21 = arith.addf %18, %20 : vector<4x256xf32>
    %cst_16 = arith.constant 0.000000e+00 : f32
    %22 = vector.broadcast %cst_16 : f32 to vector<4x256xf32>
    %23 = arith.maximumf %21, %22 : vector<4x256xf32>
    %c0_17 = arith.constant 0 : index
    %c0_18 = arith.constant 0 : index
    %24 = vector.load %arg8[%c0_17, %c0_18] : memref<2x4xf32, #tpu.memory_space<vmem>>, vector<2x4xf32>
    %cst_19 = arith.constant dense<0.000000e+00> : vector<2x256xf32>
    %25 = tpu.matmul %24, %23, %cst_19 {dimension_numbers = #tpu.dot_dimension_numbers<[1], [0], [0], [1], [0, 0, 1, 1], [], []>} : vector<2x4xf32>, vector<4x256xf32>, vector<2x256xf32> -> vector<2x256xf32>
    %c0_20 = arith.constant 0 : index
    %c0_21 = arith.constant 0 : index
    %26 = vector.load %arg9[%c0_20, %c0_21] : memref<2x1xf32, #tpu.memory_space<vmem>>, vector<2x1xf32>
    %27 = vector.broadcast %26 : vector<2x1xf32> to vector<2x256xf32>
    %28 = arith.addf %25, %27 : vector<2x256xf32>
    %cst_22 = arith.constant 0.000000e+00 : f32
    %29 = vector.broadcast %cst_22 : f32 to vector<2x256xf32>
    %30 = arith.maximumf %28, %29 : vector<2x256xf32>
    %c0_23 = arith.constant 0 : index
    %c0_24 = arith.constant 0 : index
    %31 = vector.load %arg10[%c0_23, %c0_24] : memref<1x2xf32, #tpu.memory_space<vmem>>, vector<1x2xf32>
    %cst_25 = arith.constant dense<0.000000e+00> : vector<1x256xf32>
    %32 = tpu.matmul %31, %30, %cst_25 {dimension_numbers = #tpu.dot_dimension_numbers<[1], [0], [0], [1], [0, 0, 1, 1], [], []>} : vector<1x2xf32>, vector<2x256xf32>, vector<1x256xf32> -> vector<1x256xf32>
    %c0_26 = arith.constant 0 : index
    %c0_27 = arith.constant 0 : index
    %33 = vector.load %arg11[%c0_26, %c0_27] : memref<1x1xf32, #tpu.memory_space<vmem>>, vector<1x1xf32>
    %34 = vector.broadcast %33 : vector<1x1xf32> to vector<1x256xf32>
    %35 = arith.addf %32, %34 : vector<1x256xf32>
    %c0_28 = arith.constant 0 : index
    %c0_29 = arith.constant 0 : index
    %36 = vector.load %arg12[%c0_28, %c0_29] : memref<1x256xf32, #tpu.memory_space<vmem>>, vector<1x256xf32>
    tpu.vector_store %arg12[%c0_28, %c0_29], %35 {strides = array<i32>} : memref<1x256xf32, #tpu.memory_space<vmem>>, vector<1x256xf32>,
    return
  }
  func.func @transform_0(%arg0: i32) -> (i32, i32) {
    %c0_i32 = arith.constant 0 : i32
    %c0_i32_0 = arith.constant 0 : i32
    return %c0_i32, %arg0 : i32, i32
  }
  func.func @transform_1(%arg0: i32) -> (i32, i32) {
    %c0_i32 = arith.constant 0 : i32
    %c0_i32_0 = arith.constant 0 : i32
    %c0_i32_1 = arith.constant 0 : i32
    return %c0_i32, %c0_i32_0 : i32, i32
  }
  func.func @transform_2(%arg0: i32) -> (i32, i32) {
    %c0_i32 = arith.constant 0 : i32
    %c0_i32_0 = arith.constant 0 : i32
    %c0_i32_1 = arith.constant 0 : i32
    return %c0_i32, %c0_i32_0 : i32, i32
  }
  func.func @transform_3(%arg0: i32) -> (i32, i32) {
    %c0_i32 = arith.constant 0 : i32
    %c0_i32_0 = arith.constant 0 : i32
    %c0_i32_1 = arith.constant 0 : i32
    return %c0_i32, %c0_i32_0 : i32, i32
  }
  func.func @transform_4(%arg0: i32) -> (i32, i32) {
    %c0_i32 = arith.constant 0 : i32
    %c0_i32_0 = arith.constant 0 : i32
    %c0_i32_1 = arith.constant 0 : i32
    return %c0_i32, %c0_i32_0 : i32, i32
  }
  func.func @transform_5(%arg0: i32) -> (i32, i32) {
    %c0_i32 = arith.constant 0 : i32
    %c0_i32_0 = arith.constant 0 : i32
    %c0_i32_1 = arith.constant 0 : i32
    return %c0_i32, %c0_i32_0 : i32, i32
  }
  func.func @transform_6(%arg0: i32) -> (i32, i32) {
    %c0_i32 = arith.constant 0 : i32
    %c0_i32_0 = arith.constant 0 : i32
    %c0_i32_1 = arith.constant 0 : i32
    return %c0_i32, %c0_i32_0 : i32, i32
  }
  func.func @transform_7(%arg0: i32) -> (i32, i32) {
    %c0_i32 = arith.constant 0 : i32
    %c0_i32_0 = arith.constant 0 : i32
    %c0_i32_1 = arith.constant 0 : i32
    return %c0_i32, %c0_i32_0 : i32, i32
  }
  func.func @transform_8(%arg0: i32) -> (i32, i32) {
    %c0_i32 = arith.constant 0 : i32
    %c0_i32_0 = arith.constant 0 : i32
    %c0_i32_1 = arith.constant 0 : i32
    return %c0_i32, %c0_i32_0 : i32, i32
  }
  func.func @transform_9(%arg0: i32) -> (i32, i32) {
    %c0_i32 = arith.constant 0 : i32
    %c0_i32_0 = arith.constant 0 : i32
    %c0_i32_1 = arith.constant 0 : i32
    return %c0_i32, %c0_i32_0 : i32, i32
  }
  func.func @transform_10(%arg0: i32) -> (i32, i32) {
    %c0_i32 = arith.constant 0 : i32
    %c0_i32_0 = arith.constant 0 : i32
    %c0_i32_1 = arith.constant 0 : i32
    return %c0_i32, %c0_i32_0 : i32, i32
  }
  func.func @transform_11(%arg0: i32) -> (i32, i32) {
    %c0_i32 = arith.constant 0 : i32
    %c0_i32_0 = arith.constant 0 : i32
    return %c0_i32, %arg0 : i32, i32
  }
}

</mosaic_0001>

<bundles_post_ra>
// kernel: tpu_custom_call.1
= control target key start
LH: loop header
LB: loop body
LE: loop exit
PB: predicated region body
PF: predicated region fallthrough
CT: control target
= control target key end

     0   :  { %s1284_s0 = inlined_call_operand.vmem [shape: f32[1,384], index: 0, kind: input, shape index: {}]   ;;  %s1285_s1 = inlined_call_operand.vmem [shape: f32[16,1], index: 1, kind: input, shape index: {}]   ;;  %s1286_s2 = inlined_call_operand.vmem [shape: f32[16,1], index: 2, kind: input, shape index: {}]   ;;  %s1287_s3 = inlined_call_operand.vmem [shape: f32[16,16], index: 3, kind: input, shape index: {}]   ;;  %s1288_s4 = inlined_call_operand.vmem [shape: f32[16,1], index: 4, kind: input, shape index: {}]   ;;  %s1289_s5 = inlined_call_operand.vmem [shape: f32[4,16], index: 5, kind: input, shape index: {}]   ;;  %s1290_s6 = inlined_call_operand.vmem [shape: f32[4,1], index: 6, kind: input, shape index: {}]   ;;  %s1291_s7 = inlined_call_operand.vmem [shape: f32[2,4], index: 7, kind: input, shape index: {}]   ;;  %s1292_s8 = inlined_call_operand.vmem [shape: f32[2,1], index: 8, kind: input, shape index: {}]   ;;  %s1293_s9 = inlined_call_operand.vmem [shape: f32[1,2], index: 9, kind: input, shape index: {}]   ;;  %s1294_s10 = inlined_call_operand.<no memory space> [shape: f32[1,1], index: 10, kind: input, shape index: {}]   ;;  %s1295_s11 = inlined_call_operand.hbm [shape: f32[1,384], index: 11, kind: output, shape index: {}]  }
   0x1   :  { %v16_v0 = vstv %s1294_s10 }
   0x2   :  { %17 = vst [vmem:[#allocation2] sm:$0x1] %v16_v0 }
   0x3   :  { %18 = vsyncpa [#allocation4], 0 }
   0x4   :  { %20 = vsyncpa [#allocation4 + $0x1], 0  ;;  %s1122_s19 = smov 0   ;;  %s1124_s20 = smov 0  }
   0x5   :  { %s1126_s21 = smov 0   ;;  %s1128_s22 = smov 0  }
   0x6 LB: > { %s1143_s10 = sadd.s32 4294967295, %s1053_s22   ;;  %s927_s23 = sadd.s32 4294967294, %s1053_s22   ;;  %s1053_s22 = sphi %s1128_s22, %s1301_s22   ;;  %s1049_s21 = sphi %s1126_s21, %s1300_s21   ;;  %s1045_s20 = sphi %s1124_s20, %s1299_s20   ;;  %s1041_s19 = sphi %s1122_s19, %s1298_s19  }
   0x7   : > { %s1147_s24 = sadd.s32 1, %s1053_s22   ;;  %s269_s25 = sadd.s32 1, %s1049_s21 }
   0x8   : > { %s266_s26 = ssub.s32 %s1053_s22, %s1147_s24  ;;  %p279_p0 = scmp.ne.s32.totalorder %s1049_s21, %s1045_s20 }
   0x9   : > { %p267_p1 = scmp.eq.s32.totalorder %s266_s26, 0  ;;  %p280_p2 = scmp.eq.s32.totalorder %s1143_s10, 1 }
   0xa   : > { %p285_p3 = scmp.ne.s32.totalorder %s1045_s20, %s1041_s19  ;;  %p286_p4 = scmp.eq.s32.totalorder %s927_s23, 1 }
   0xb   : > { %s1158_s27 = scalar_select %p267_p1, %s1049_s21, %s269_s25  }
   0xc   : > { %p1160_p5 = por %p280_p2, %p279_p0  ;;  %p1164_p6 = por %p286_p4, %p285_p3 }
   0xd   : > { %p930_p7 = scmp.ge.s32.totalorder %s1053_s22, 1  ;;  %p350_p8 = scmp.lt.s32.totalorder %s1053_s22, 3 }
   0xf   : > { %p351_p9 = pnand %p930_p7, %p350_p8 }
  0x10   : > { %s1197_s16 = sshll.u32 (!%p351_p9), %s1143_s10, 1  ;;  %s390_s26 = sand.u32 (!%p351_p9), 1, %s1045_s20  }
  0x11   : > { %354 = sbr.rel (%p351_p9) target bundleno = 999 (0x3e7), region = 64  ;;  %p398_p10 = scmp.lt.s32.totalorder (!%p351_p9), %s1197_s16, 2 }
  0x12   : > { %s931_s30 = sshll.u32 (!%p351_p9), %s390_s26, 1  ;;  %s1237_s13 = scalar_lea.sflag (!%p351_p9), [#allocation4], %s390_s26 }
  0x13   : > { %s392_s12 = scalar_lea.vmem (!%p351_p9), [#allocation3], %s931_s30 }
  0x16   : > { %v440_v1 = vld [vmem:[%s1286_s2 + $0x8] sm:$0xff]  ;;  %v1055_v3 = vmov 0   ;;  %v439_v4 = vld [vmem:[%s1286_s2] sm:$0xff]  ;;  %v1056_v8 = vmov 0.0   ;;  %v425_v12 = vlaneseq  ;;  %s399_s17 = scalar_select %p398_p10, %s1197_s16, 2  ;;  %vm473_vm0 = vcmask 130048  }
  0x17   : > { %v413_v2 = vld [vmem:[%s1285_s1 + $0x8] sm:$0xff]  ;;  %992 = vset.pattern.permute.xlu1 %v1055_v3  ;;  %991 = vset.pattern.permute.xlu0 %v1055_v3  ;;  %v412_v5 = vld [vmem:[%s1285_s1] sm:$0xff]  ;;  %vm655_vm1 = vcmask 1043456   ;;  %vm651_vm2 = vcmask 31744   ;;  %vm750_vm3 = vcmask 1041408   ;;  %vm746_vm4 = vcmask 15360  }
  0x18   : > { %448 = vperm.xlu1 %992, %v440_v1   ;;  %421 = vperm.xlu0 %991, %v413_v2   ;;  %v461_v6 = vld [vmem:[%s1288_s4] sm:$0xff]  ;;  %v462_v7 = vld [vmem:[%s1288_s4 + $0x8] sm:$0xff]  ;;  %v1202_v13 = vshrl.u32 %v425_v12, 7  ;;  %s400_s25 = scalar_lea.vmem %s1284_s0, %s399_s17  ;;  %vm848_vm5 = vcmp.lt.s32.totalorder %v425_v12, 256  ;;  %s860_s14 = ssub.s32 (%p1160_p5), 3, %s1197_s16 }
  0x19   : > { %544 = vmatprep.mubr.f32.mxu0 %v1056_v8  ;;  %635 = vmatprep.mubr.f32.mxu1 %v1056_v8  ;;  %v645_v9 = vld [vmem:[%s1292_s8] sm:$0x3]  ;;  %v460_v36 = vld [vmem:[%s1287_s3 + $0x8] sm:$0xff]  ;;  %p861_p11 = scmp.lt.s32.totalorder (%p1160_p5), %s860_s14, 2 }
  0x1a   : > { %v562_v10 = vld [vmem:[%s1290_s6] sm:$0xf]  ;;  %v427_v14 = vsub.s32 0, %v1202_v13  ;;  %v431_v15 = vsub.s32 1, %v1202_v13 }
  0x1b   : > { %v736_v11 = vld [vmem:[#allocation2] sm:$0x1] }
  0x1c   : > { %443 = vperm.xlu1 %992, %v439_v4   ;;  %416 = vperm.xlu0 %991, %v412_v5   ;;  %v411_v16 = vld [vmem:[%s400_s25] sm:$0x3]  ;;  %v1057_v4 = vmov 1966171168  }
  0x1d   : > { %v428_v17 = vrot.slane %v411_v16, %v427_v14  ;;  %v432_v18 = vrot.slane %v411_v16, %v431_v15  ;;  %v459_v35 = vld [vmem:[%s1287_s3] sm:$0xff]  ;;  %v832_v5 = vunpack.c.l.s4 %v1057_v4 }
  0x1e   : > { %v561_v51 = vld [vmem:[%s1289_s5] sm:$0xf] }
  0x1f   : > { %v644_v59 = vld [vmem:[%s1291_s7] sm:$0x3] }
  0x20   : > { %465 = vperm.xlu1 %992, %v461_v6   ;;  %470 = vperm.xlu0 %991, %v462_v7   ;;  %v735_v3 = vld [vmem:[%s1293_s9] sm:$0x1]  ;;  %v833_v7 = vunpack.c.0.s8 %v832_v5 }
  0x22   : > { %v836_v16 = vsub.s32 %v833_v7, %v1202_v13 }
  0x24   : > { %648 = vperm.xlu1 %992, %v645_v9   ;;  %565 = vperm.xlu0 %991, %v562_v10  }
  0x28   : > { %739 = vperm.xlu0 %991, %v736_v11  }
  0x93   : > { %v449_v19 = vpop.permute.xlu1 %448  ;;  %v422_v20 = vpop.permute.xlu0 %421 }
  0x94   : > { %v437_v21 = vmul.f32 %v428_v17, %v422_v20  ;;  %v438_v22 = vmul.f32 %v432_v18, %v422_v20 }
  0x96   : > { %v454_v23 = vadd.f32 %v449_v19, %v438_v22  ;;  %v453_v24 = vadd.f32 %v449_v19, %v437_v21 }
  0x97   : > { %v417_v25 = vpop.permute.xlu0 %416  ;;  %v444_v30 = vpop.permute.xlu1 %443 }
  0x98   : > { %v435_v26 = vmul.f32 %v428_v17, %v417_v25  ;;  %v436_v27 = vmul.f32 %v432_v18, %v417_v25  ;;  %v458_v28 = vmax.f32 %v454_v23, 0.0  ;;  %v457_v29 = vmax.f32 %v453_v24, 0.0 }
  0x9a   : > { %v451_v31 = vadd.f32 %v444_v30, %v435_v26  ;;  %v452_v32 = vadd.f32 %v444_v30, %v436_v27  ;;  %508 = vmatprep.subr.mxu0 %v458_v28 }
  0x9b   : > { %509 = vmatpush1.msra.mxu0 %v457_v29  ;;  %v471_v40 = vpop.permute.xlu0 %470  ;;  %v466_v41 = vpop.permute.xlu1 %465 }
  0x9c   : > { %v456_v33 = vmax.f32 %v452_v32, 0.0  ;;  %v455_v34 = vmax.f32 %v451_v31, 0.0 }
  0x9e   : > { %510 = vmatprep.subr.mxu0 %v456_v33 }
  0x9f   : > { %511 = vmatpush1.msra.mxu0 %v455_v34  ;;  %v566_v53 = vpop.permute.xlu0 %565  ;;  %v649_v61 = vpop.permute.xlu1 %648 }
  0xa0   : > { %933 = vmatmul.mubr.msk.f32.vlgmr.msra.gmra.mxu0 %vm473_vm0, %v459_v35 }
  0xa1   : > { %550 = vmatprep.mubr.f32.mxu0 %v1056_v8 }
  0xa3   : > { %v740_v6 = vpop.permute.xlu0 %739 }
  0xa4   : > { %934 = vmatmul.mubr.msk.f32.gmra.mxu0 %vm473_vm0, %v460_v36  ;;  %v745_v9 = vrot.slane %v740_v6, %v427_v14 }
  0xa5   : > { %821 = vmatprep.mubr.f32.mxu0 %v1056_v8 }
 0x160   : > { %v546_v37 = vpop.f32.mrf.mxu0 }
 0x161   : > { %v547_v46 = vadd.f32 %v546_v37, %v466_v41 }
 0x162   : > { %v548_v38 = vpop.f32.mrf.mxu0 }
 0x163   : > { %v549_v44 = vadd.f32 %v548_v38, %v466_v41  ;;  %v557_v50 = vmax.f32 %v547_v46, 0.0 }
 0x164   : > { %v552_v39 = vpop.f32.mrf.mxu0 }
 0x165   : > { %v553_v42 = vadd.f32 %v552_v39, %v471_v40  ;;  %v558_v49 = vmax.f32 %v549_v44, 0.0 }
 0x166   : > { %v554_v43 = vpop.f32.mrf.mxu0 }
 0x167   : > { %v555_v45 = vadd.f32 %v554_v43, %v471_v40  ;;  %v559_v48 = vmax.f32 %v553_v42, 0.0 }
 0x169   : > { %v560_v47 = vmax.f32 %v555_v45, 0.0 }
 0x16b   : > { %599 = vmatprep.subr.mxu1 %v560_v47 }
 0x16c   : > { %600 = vmatpush1.msra.mxu1 %v559_v48 }
 0x16d   : > { %601 = vmatprep.subr.mxu1 %v558_v49 }
 0x16e   : > { %602 = vmatpush1.msra.mxu1 %v557_v50 }
 0x16f   : > { %935 = vmatmul.mubr.msk.f32.vlgmr.msra.gmra.mxu1 %vm473_vm0, %v561_v51 }
 0x170   : > { %726 = vmatprep.mubr.f32.mxu1 %v1056_v8 }
 0x22f   : > { %v637_v52 = vpop.f32.mrf.mxu1 }
 0x230   : > { %v638_v54 = vadd.f32 %v637_v52, %v566_v53 }
 0x231   : > { %v639_v55 = vpop.f32.mrf.mxu1 }
 0x232   : > { %v640_v56 = vadd.f32 %v639_v55, %v566_v53  ;;  %v642_v58 = vmax.f32 %v638_v54, 0.0 }
 0x234   : > { %v643_v57 = vmax.f32 %v640_v56, 0.0 }
 0x236   : > { %936 = vmatprep.subr.msk.mxu1 %vm655_vm1, %v643_v57 }
 0x237   : > { %937 = vmatpush1.msk.msra.mxu1 %vm655_vm1, %v642_v58 }
 0x238   : > { %938 = vmatmul.mubr.msk.f32.vlgmr.msra.gmra.mxu1 %vm651_vm2, %v644_v59 }
 0x2f8   : > { %v728_v60 = vpop.f32.mrf.mxu1 }
 0x2f9   : > { %v729_v62 = vadd.f32 %v728_v60, %v649_v61 }
 0x2fa   : > { %v730_v63 = vpop.f32.mrf.mxu1 }
 0x2fb   : > { %v731_v0 = vadd.f32 %v730_v63, %v649_v61  ;;  %v733_v2 = vmax.f32 %v729_v62, 0.0 }
 0x2fd   : > { %v734_v1 = vmax.f32 %v731_v0, 0.0 }
 0x2ff   : > { %939 = vmatprep.subr.msk.mxu0 %vm750_vm3, %v734_v1 }
 0x300   : > { %940 = vmatpush1.msk.msra.mxu0 %vm750_vm3, %v733_v2 }
 0x301   : > { %941 = vmatmul.mubr.msk.f32.vlgmr.msra.gmra.mxu0 %vm746_vm4, %v735_v3 }
 0x3c1   : > { %v823_v8 = vpop.f32.mrf.mxu0 }
 0x3c2   : > { %v824_v11 = vadd.f32 %v823_v8, %v745_v9 }
 0x3c3   : > { %v825_v10 = vpop.f32.mrf.mxu0 }
 0x3c4   : > { %v826_v15 = vadd.f32 %v825_v10, %v745_v9 }
 0x3c6   : > { %v830_v17 = vcombine.low %v824_v11, %v826_v15 }
 0x3c8   : > { %v837_v18 = vrot.slane %v830_v17, %v836_v16  ;;  %858 = sbr.rel (!%p1160_p5) target bundleno = 999 (0x3e7), region = 68 }
 0x3ca   : > { %v844_v19 = vrot.slane %v837_v18, %v836_v16 }
 0x3cc   : > { %850 = vst.msk [vmem:[%s392_s12] sm:$0x3] %vm848_vm5, %v844_v19 }
 0x3cd   : > { %s1303_s14 = smov (!%p861_p11, %s860_s14), 2 }
 0x3ce   : > { %s1242_s15 = sshll.u32 %s1303_s14, 4 }
 0x3cf   : > { %s865_s17 = ssub.s32 32, %s1242_s15 }
 0x3d0   : > { %866 = vsyncadd %s1237_s13, %s865_s17  ;;  %p945_p12 = scmp.ne.s32.totalorder %s1242_s15, 0  ;;  %s949_s18 = sshll.u32 %s1143_s10, 5 }
 0x3d1   : > { %s869_s28 = scalar_lea.hbm %s1295_s11, %s949_s18  ;;  %s871_s26 = sshll.u32 %s392_s12, 4  ;;  %s872_s26 = int_to_ptr.vmem [resolvable:$true] %s871_s26 }
 0x3d2   : > { %s993_s16 = scalar_lea.vmem %s872_s26, %s1242_s15  ;;  %s1058_s30 = smov [#allocation3]  }
 0x3d3   : > { %p994_p13 = scmp.ne.s32.totalorder %s872_s26, %s993_s16  ;;  %s997_s14 = sshll.u32 %s1058_s30, 4  ;;  %s998_s14 = int_to_ptr.vmem [resolvable:$false] %s997_s14 }
 0x3d4   : > { %s999_s17 = scalar_lea.vmem %s998_s14, 64  ;;  %p1000_p2 = scmp.lt.s32.totalorder %s872_s26, %s998_s14 }
 0x3d5   : > { %p995_p0 = pnand %p994_p13, %p945_p12  ;;  %p1001_p3 = scmp.lt.s32.totalorder %s999_s17, %s993_s16 }
 0x3d7   : > { %p996_p1 = pneg %p995_p0  ;;  %p1002_p4 = por %p1001_p3, %p1000_p2 }
 0x3d9   : > { %p1003_p5 = pnand %p1002_p4, %p996_p1 }
 0x3db   : > { %1006 = shalt.err (!%p1003_p5)
}
 0x3dc   : > { %s1007_s10 = scalar_lea.hbm %s869_s28, %s1242_s15  ;;  %s1011_s23 = scalar_lea.hbm %s1295_s11, 48 }
 0x3dd   : > { %p1008_p7 = scmp.ne.s32.totalorder %s869_s28, %s1007_s10  ;;  %p1012_p10 = scmp.lt.s32.totalorder %s869_s28, %s1295_s11 }
 0x3de   : > { %p1013_p11 = scmp.lt.s32.totalorder %s1011_s23, %s1007_s10 }
 0x3df   : > { %p1009_p8 = pnand %p1008_p7, %p945_p12 }
 0x3e0   : > { %p1014_p13 = por %p1013_p11, %p1012_p10 }
 0x3e1   : > { %p1010_p9 = pneg %p1009_p8 }
 0x3e3   : > { %p1015_p0 = pnand %p1014_p13, %p1010_p9 }
 0x3e5   : > { %1018 = shalt.err (!%p1015_p0)
}
 0x3e6   : > { %874 = dma.vmem_to_hbm [thread:$0]  (%p945_p12), %s872_s26, %s1242_s15, %s869_s28, %s1237_s13  }
 0x3e7 PF: > { %p955_p1 = scmp.ge.s32.totalorder %s1053_s22, 2  ;;  %s883_s16 = sand.u32 1, %s1041_s19  }
 0x3e8   : > { %s884_s14 = scalar_lea.sflag [#allocation4], %s883_s16 }
 0x3e9   : > { %p952_p2 = pnand %p955_p1, %p1164_p6 }
 0x3eb   : > { %p953_p3 = pneg %p952_p2 }
 0x3ed   : > { %1036 = dma.done.wait (%p953_p3), %s884_s14, 32  }
 0x3ee   : > { %1038 = vsyncadd (%p953_p3), %s884_s14, 4294967264  ;;  %p23_p4 = scmp.ge.s32.totalorder %s1147_s24, 4   ;;  %s1298_s19 = smov %s1045_s20 }
 0x3ef   : > { %s1299_s20 = smov %s1049_s21  ;;  %s1300_s21 = smov %s1158_s27 }
 0x3f0   : > { %s1301_s22 = smov %s1147_s24  ;;  %25 = sbr.rel (!%p23_p4) target bundleno = 6 (0x6), region = 99 }
 0x3f5   :  { %889 = vsyncpa [#allocation4], 1 }
 0x3f6   :  { %891 = vsyncpa [#allocation4 + $0x1], 1 }

</bundles_post_ra>
